<compile_context>
chip_gen: v5e
topology: v5e:2x2
jax: 0.10.0
libtpu: 0.0.40
codegen_flags: <defaults>
</compile_context>

<pallas_src>
import functools

import jax
import jax.numpy as jnp
import numpy as np
from jax import lax
from jax.experimental import pallas as pl
from jax.experimental.pallas import tpu as pltpu


def _se_kernel(x_ref, w1_ref, b1_ref, w2t_ref, b2_ref, o_ref, *, inv_hw):
    # x_ref : (Bt, C, HW)
    # w1    : (hidden, C)   b1 : (1, hidden)     (PyTorch (out, in) layout)
    # w2t   : (hidden, C)   b2 : (1, C)          (w2 transposed in the wrapper)

    # --- squeeze: global average pool over spatial lanes (f32 accumulation) ---
    pooled = jnp.sum(x_ref[...], axis=-1, dtype=jnp.float32) * inv_hw   # (Bt, C)

    # --- excitation: Linear -> ReLU -> Linear -> Sigmoid (batched over Bt) ---
    h = lax.dot_general(pooled, w1_ref[...],
                        dimension_numbers=(((1,), (1,)), ((), ())),
                        preferred_element_type=jnp.float32) + b1_ref[...]   # (Bt, hidden)
    h = jnp.maximum(h, 0.0)
    s = jnp.dot(h, w2t_ref[...],
                preferred_element_type=jnp.float32) + b2_ref[...]           # (Bt, C)
    s = jax.nn.sigmoid(s)

    # --- scale: native-dtype multiply, gate cast down, x_ref re-read (cheap) ---
    o_ref[...] = x_ref[...] * s.astype(o_ref.dtype)[:, :, None]


def _choose_batch_tile(batch, bytes_per_image, target_bytes=8 << 20, min_steps=8):
    """Largest Bt with block <= target_bytes while keeping ~min_steps grid
    steps (>= 3-4 blocks per TensorCore on v7x) when the batch allows it."""
    by_size = max(1, target_bytes // max(1, bytes_per_image))
    steps = max(1, min(batch, min_steps))
    by_steps = (batch + steps - 1) // steps
    return max(1, min(batch, by_size, by_steps))


def knowledge_attention(x, w1, b1, w2, b2):
    """x: (B, C, H, W); weights in PyTorch Linear (out, in) layout."""
    B, C, H, W = x.shape
    hidden = w1.shape[0]
    HW = H * W

    # Free (metadata-only) reshape: no extra HBM pass.
    x_flat = x.reshape(B, C, HW)

    # Keep both weights with C on the lane axis: (hidden, C).
    w1m = w1                                    # (hidden, C)
    w2t = jnp.transpose(w2)                     # (hidden, C)
    b1r = b1.reshape(1, hidden)
    b2r = b2.reshape(1, C)

    itemsize = x.dtype.itemsize
    bytes_per_image = C * HW * itemsize
    Bt = _choose_batch_tile(B, bytes_per_image)
    grid = (pl.cdiv(B, Bt),)

    # VMEM budget: double-buffered input + output blocks + params + slack.
    block_bytes = Bt * bytes_per_image
    param_bytes = (w1m.size * w1m.dtype.itemsize + w2t.size * w2t.dtype.itemsize
                   + b1r.size * b1r.dtype.itemsize + b2r.size * b2r.dtype.itemsize)
    vmem_needed = 4 * block_bytes + 2 * param_bytes + (4 << 20)
    vmem_limit = int(max(min(vmem_needed, 48 << 20), 16 << 20))
    if vmem_needed > (48 << 20):
        # Huge per-image maps (forced Bt=1): grant what the block actually needs.
        # TODO(synk): two-pass pool-then-scale structure for maps that do not
        # fit even at Bt=1 on v7x's 64 MiB VMEM.
        vmem_limit = int(min(vmem_needed, 100 << 20))

    cost = pl.CostEstimate(
        flops=2 * B * C * HW + 4 * B * C * hidden,
        transcendentals=B * C,                              # sigmoid
        bytes_accessed=2 * B * C * HW * itemsize + param_bytes,
    )

    kernel = functools.partial(_se_kernel, inv_hw=float(1.0 / HW))

    out_flat = pl.pallas_call(
        kernel,
        out_shape=jax.ShapeDtypeStruct((B, C, HW), x.dtype),
        grid_spec=pltpu.PrefetchScalarGridSpec(
            num_scalar_prefetch=0,
            grid=grid,
            in_specs=[
                pl.BlockSpec((Bt, C, HW), lambda i: (i, 0, 0)),   # x (batch tile)
                pl.BlockSpec((hidden, C), lambda i: (0, 0)),      # w1
                pl.BlockSpec((1, hidden), lambda i: (0, 0)),      # b1
                pl.BlockSpec((hidden, C), lambda i: (0, 0)),      # w2^T
                pl.BlockSpec((1, C), lambda i: (0, 0)),           # b2
            ],
            out_specs=pl.BlockSpec((Bt, C, HW), lambda i: (i, 0, 0)),
        ),
        compiler_params=pltpu.CompilerParams(
            dimension_semantics=("parallel",),
            vmem_limit_bytes=vmem_limit,
        ),
        cost_estimate=cost,
    )(x_flat, w1m, b1r, w2t, b2r)

    return out_flat.reshape(B, C, H, W)


def _reference(x, w1, b1, w2, b2):
    y = x.mean(axis=(2, 3))                                   # (B, C)
    h = jnp.maximum(y @ w1.T + b1, 0.0)                       # (B, C//16)
    s = jax.nn.sigmoid(h @ w2.T + b2)                         # (B, C)
    return x * s[:, :, None, None]


if __name__ == "__main__":
    # in_channels must be >= 16 for the C // 16 bottleneck; use C = 64.
    B, C, H, W = 2, 64, 16, 16
    hidden = C // 16

    key = jax.random.PRNGKey(0)
    kx, k1, k2, k3, k4 = jax.random.split(key, 5)
    x = jax.random.normal(kx, (B, C, H, W), dtype=jnp.float32)

    # Deterministic synthetic parameters (PyTorch Linear layout: (out, in)).
    w1 = 0.1 * jax.random.normal(k1, (hidden, C), dtype=jnp.float32)
    b1 = 0.1 * jax.random.normal(k2, (hidden,), dtype=jnp.float32)
    w2 = 0.1 * jax.random.normal(k3, (C, hidden), dtype=jnp.float32)
    b2 = 0.1 * jax.random.normal(k4, (C,), dtype=jnp.float32)

    out = knowledge_attention(x, w1, b1, w2, b2)
    out = jax.block_until_ready(out)

    ref = _reference(x, w1, b1, w2, b2)
    np.testing.assert_allclose(np.asarray(out), np.asarray(ref),
                               rtol=1e-5, atol=1e-5)
    print("KERNEL_OK")
</pallas_src>

<mosaic_0001>
module attributes {stable_mosaic.version = 11 : i64} {
  func.func @_se_kernel(%arg0: i32, %arg1: memref<1x64x256xf32, #tpu.memory_space<vmem>>, %arg2: memref<4x64xf32, #tpu.memory_space<vmem>>, %arg3: memref<1x4xf32, #tpu.memory_space<vmem>>, %arg4: memref<4x64xf32, #tpu.memory_space<vmem>>, %arg5: memref<1x64xf32, #tpu.memory_space<vmem>>, %arg6: memref<1x64x256xf32, #tpu.memory_space<vmem>>) attributes {dimension_semantics = [#tpu.dimension_semantics<parallel>], iteration_bounds = array<i64: 2>, scalar_prefetch = 0 : i64, scratch_operands = 0 : i64, tpu.core_type = #tpu.core_type<tc>, window_params = [{transform_indices = @transform_0, window_bounds = array<i64: 1, 64, 256>}, {pipeline_mode = #tpu.pipeline_mode<synchronous>, transform_indices = @transform_1, window_bounds = array<i64: 4, 64>}, {pipeline_mode = #tpu.pipeline_mode<synchronous>, transform_indices = @transform_2, window_bounds = array<i64: 1, 4>}, {pipeline_mode = #tpu.pipeline_mode<synchronous>, transform_indices = @transform_3, window_bounds = array<i64: 4, 64>}, {pipeline_mode = #tpu.pipeline_mode<synchronous>, transform_indices = @transform_4, window_bounds = array<i64: 1, 64>}, {transform_indices = @transform_5, window_bounds = array<i64: 1, 64, 256>}]} {
    %c0 = arith.constant 0 : index
    %c0_0 = arith.constant 0 : index
    %c0_1 = arith.constant 0 : index
    %0 = vector.load %arg1[%c0, %c0_0, %c0_1] : memref<1x64x256xf32, #tpu.memory_space<vmem>>, vector<1x64x256xf32>
    %cst = arith.constant dense<0.000000e+00> : vector<1x64xf32>
    %1 = vector.multi_reduction <add>, %0, %cst [2] : vector<1x64x256xf32> to vector<1x64xf32>
    %cst_2 = arith.constant 3.906250e-03 : f32
    %2 = vector.broadcast %cst_2 : f32 to vector<1x64xf32>
    %3 = arith.mulf %1, %2 : vector<1x64xf32>
    %c0_3 = arith.constant 0 : index
    %c0_4 = arith.constant 0 : index
    %4 = vector.load %arg2[%c0_3, %c0_4] : memref<4x64xf32, #tpu.memory_space<vmem>>, vector<4x64xf32>
    %cst_5 = arith.constant dense<0.000000e+00> : vector<1x4xf32>
    %5 = tpu.matmul %3, %4, %cst_5 {dimension_numbers = #tpu.dot_dimension_numbers<[1], [1], [0], [0], [0, 0, 1, 0], [], []>} : vector<1x64xf32>, vector<4x64xf32>, vector<1x4xf32> -> vector<1x4xf32>
    %c0_6 = arith.constant 0 : index
    %c0_7 = arith.constant 0 : index
    %6 = vector.load %arg3[%c0_6, %c0_7] : memref<1x4xf32, #tpu.memory_space<vmem>>, vector<1x4xf32>
    %7 = arith.addf %5, %6 : vector<1x4xf32>
    %cst_8 = arith.constant 0.000000e+00 : f32
    %8 = vector.broadcast %cst_8 : f32 to vector<1x4xf32>
    %9 = arith.maximumf %7, %8 : vector<1x4xf32>
    %c0_9 = arith.constant 0 : index
    %c0_10 = arith.constant 0 : index
    %10 = vector.load %arg4[%c0_9, %c0_10] : memref<4x64xf32, #tpu.memory_space<vmem>>, vector<4x64xf32>
    %cst_11 = arith.constant dense<0.000000e+00> : vector<1x64xf32>
    %11 = tpu.matmul %9, %10, %cst_11 {dimension_numbers = #tpu.dot_dimension_numbers<[1], [0], [0], [1], [0, 0, 1, 1], [], []>} : vector<1x4xf32>, vector<4x64xf32>, vector<1x64xf32> -> vector<1x64xf32>
    %c0_12 = arith.constant 0 : index
    %c0_13 = arith.constant 0 : index
    %12 = vector.load %arg5[%c0_12, %c0_13] : memref<1x64xf32, #tpu.memory_space<vmem>>, vector<1x64xf32>
    %13 = arith.addf %11, %12 : vector<1x64xf32>
    %14 = arith.negf %13 : vector<1x64xf32>
    %15 = math.exp %14 : vector<1x64xf32>
    %cst_14 = arith.constant 1.000000e+00 : f32
    %16 = vector.broadcast %cst_14 : f32 to vector<1x64xf32>
    %17 = arith.addf %16, %15 : vector<1x64xf32>
    %18 = arith.divf %16, %17 : vector<1x64xf32>
    %c0_15 = arith.constant 0 : index
    %c0_16 = arith.constant 0 : index
    %c0_17 = arith.constant 0 : index
    %19 = vector.load %arg1[%c0_15, %c0_16, %c0_17] : memref<1x64x256xf32, #tpu.memory_space<vmem>>, vector<1x64x256xf32>
    %20 = vector.shape_cast %18 : vector<1x64xf32> to vector<1x64x1xf32>
    %21 = vector.broadcast %20 : vector<1x64x1xf32> to vector<1x64x256xf32>
    %22 = arith.mulf %19, %21 : vector<1x64x256xf32>
    %c0_18 = arith.constant 0 : index
    %c0_19 = arith.constant 0 : index
    %c0_20 = arith.constant 0 : index
    %23 = vector.load %arg6[%c0_18, %c0_19, %c0_20] : memref<1x64x256xf32, #tpu.memory_space<vmem>>, vector<1x64x256xf32>
    tpu.vector_store %arg6[%c0_18, %c0_19, %c0_20], %22 {strides = array<i32>} : memref<1x64x256xf32, #tpu.memory_space<vmem>>, vector<1x64x256xf32>,
    return
  }
  func.func @transform_0(%arg0: i32) -> (i32, i32, i32) {
    %c0_i32 = arith.constant 0 : i32
    %c0_i32_0 = arith.constant 0 : i32
    %c0_i32_1 = arith.constant 0 : i32
    return %arg0, %c0_i32, %c0_i32_0 : i32, i32, i32
  }
  func.func @transform_1(%arg0: i32) -> (i32, i32) {
    %c0_i32 = arith.constant 0 : i32
    %c0_i32_0 = arith.constant 0 : i32
    %c0_i32_1 = arith.constant 0 : i32
    return %c0_i32, %c0_i32_0 : i32, i32
  }
  func.func @transform_2(%arg0: i32) -> (i32, i32) {
    %c0_i32 = arith.constant 0 : i32
    %c0_i32_0 = arith.constant 0 : i32
    %c0_i32_1 = arith.constant 0 : i32
    return %c0_i32, %c0_i32_0 : i32, i32
  }
  func.func @transform_3(%arg0: i32) -> (i32, i32) {
    %c0_i32 = arith.constant 0 : i32
    %c0_i32_0 = arith.constant 0 : i32
    %c0_i32_1 = arith.constant 0 : i32
    return %c0_i32, %c0_i32_0 : i32, i32
  }
  func.func @transform_4(%arg0: i32) -> (i32, i32) {
    %c0_i32 = arith.constant 0 : i32
    %c0_i32_0 = arith.constant 0 : i32
    %c0_i32_1 = arith.constant 0 : i32
    return %c0_i32, %c0_i32_0 : i32, i32
  }
  func.func @transform_5(%arg0: i32) -> (i32, i32, i32) {
    %c0_i32 = arith.constant 0 : i32
    %c0_i32_0 = arith.constant 0 : i32
    %c0_i32_1 = arith.constant 0 : i32
    return %arg0, %c0_i32, %c0_i32_0 : i32, i32, i32
  }
}

</mosaic_0001>

<bundles_post_ra>
// kernel: tpu_custom_call.1
= control target key start
LH: loop header
LB: loop body
LE: loop exit
PB: predicated region body
PF: predicated region fallthrough
CT: control target
= control target key end

     0   :  { %s1193_s0 = inlined_call_operand.hbm [shape: f32[2,64,256], index: 0, kind: input, shape index: {}]   ;;  %s1194_s1 = inlined_call_operand.hbm [shape: f32[4,64], index: 1, kind: input, shape index: {}]   ;;  %s1195_s2 = inlined_call_operand.vmem [shape: f32[1,4], index: 2, kind: input, shape index: {}]   ;;  %s1196_s3 = inlined_call_operand.hbm [shape: f32[4,64], index: 3, kind: input, shape index: {}]   ;;  %s1197_s4 = inlined_call_operand.vmem [shape: f32[1,64], index: 4, kind: input, shape index: {}]   ;;  %s1198_s5 = inlined_call_operand.hbm [shape: f32[2,64,256], index: 5, kind: output, shape index: {}]  }
   0x1   :  { %1199 = sst [smem:[#allocation12_spill]] %s1194_s1 }
   0x2   :  { %1200 = sst [smem:[#allocation13_spill]] %s1196_s3 }
   0x3   :  { %10 = vsyncpa [#allocation3], 0 }
   0x4   :  { %12 = vsyncpa [#allocation3 + $0x1], 0 }
   0x5   :  { %13 = vsyncpa [#allocation6], 0 }
   0x6   :  { %14 = vsyncpa [#allocation4], 0 }
   0x7   :  { %16 = vsyncpa [#allocation4 + $0x1], 0  ;;  %s935_s18 = smov 0   ;;  %s937_s19 = smov 0  }
   0x8   :  { %s939_s20 = smov 0   ;;  %s941_s21 = smov 0  }
   0x9 LB: > { %s956_s22 = sadd.s32 4294967295, %s897_s21   ;;  %s628_s23 = sadd.s32 4294967294, %s897_s21   ;;  %s897_s21 = sphi %s941_s21, %s1213_s21   ;;  %s893_s20 = sphi %s939_s20, %s1212_s20   ;;  %s889_s19 = sphi %s937_s19, %s1211_s19   ;;  %s885_s18 = sphi %s935_s18, %s1210_s18  }
   0xa   : > { %s960_s24 = sadd.s32 1, %s897_s21   ;;  %s29_s25 = sadd.s32 1, %s893_s20 }
   0xb   : > { %s26_s26 = ssub.s32 %s897_s21, %s960_s24  ;;  %p36_p0 = scmp.ne.s32.totalorder %s893_s20, %s889_s19 }
   0xc   : > { %p27_p1 = scmp.eq.s32.totalorder %s26_s26, 0  ;;  %p37_p2 = scmp.eq.s32.totalorder %s897_s21, 0 }
   0xd   : > { %p42_p3 = scmp.ne.s32.totalorder %s889_s19, %s885_s18  ;;  %p43_p4 = scmp.eq.s32.totalorder %s956_s22, 0 }
   0xe   : > { %s972_s27 = scalar_select %p27_p1, %s893_s20, %s29_s25  }
   0xf   : > { %p974_p5 = por %p37_p2, %p36_p0  ;;  %p980_p6 = por %p43_p4, %p42_p3 }
  0x10   : > { %p150_p7 = scmp.eq.s32.totalorder %s956_s22, 1  ;;  %p156_p8 = scmp.eq.s32.totalorder %s628_s23, 1 }
  0x11   : > { %p629_p9 = scmp.ge.s32.totalorder %s897_s21, 1  ;;  %p163_p10 = scmp.lt.s32.totalorder %s897_s21, 3 }
  0x12   : > { %p987_p11 = por %p150_p7, %p36_p0  ;;  %p991_p12 = por %p156_p8, %p42_p3 }
  0x13   : > { %p995_p13 = pnand %p629_p9, %p163_p10  ;;  %s1206_s1 = sld [smem:[#allocation12_spill]] }
  0x14   : > { %s899_s11 = smov [#allocation5]   ;;  %p682_p3 = scmp.lt.s32.totalorder %s897_s21, 2 }
  0x15   : > { %p665_p1 = pneg %p995_p13  ;;  %s177_s12 = sshll.u32 %s899_s11, 4  ;;  %s178_s12 = int_to_ptr.vmem [resolvable:$true] %s177_s12 }
  0x16   : > { %s1207_s3 = sld [smem:[#allocation13_spill]]  ;;  %p1013_p7 = pnand %p682_p3, %p974_p5 }
  0x17   : > { %p666_p2 = pnand %p665_p1, %p43_p4  ;;  %s900_s17 = smov [#allocation7]  }
  0x18   : > { %s192_s23 = sshll.u32 %s900_s17, 4  ;;  %s206_s25 = sand.u32 1, %s893_s20   ;;  %s193_s23 = int_to_ptr.vmem [resolvable:$true] %s192_s23 }
  0x19   : > { %s175_s10 = sshll.u32 %s1206_s1, 4  ;;  %s633_s26 = sshll.u32 %s206_s25, 7  ;;  %s176_s10 = int_to_ptr.hbm [resolvable:$true] %s175_s10 }
  0x1a   : > { %668 = dma.hbm_to_vmem [thread:$0]  (!%p666_p2), %s176_s10, 64, %s178_s12, [#allocation6]  }
  0x1b   : > { %s651_s8 = sshll.u32 %s897_s21, 7  ;;  %s210_s14 = scalar_lea.vmem [#allocation2], %s633_s26 }
  0x1c   : > { %s190_s15 = sshll.u32 %s1207_s3, 4  ;;  %s215_s13 = scalar_lea.hbm %s1193_s0, %s651_s8  ;;  %s191_s15 = int_to_ptr.hbm [resolvable:$true] %s190_s15 }
  0x1d   : > { %671 = dma.hbm_to_vmem [thread:$0]  (!%p666_p2), %s191_s15, 64, %s193_s23, [#allocation6]  }
  0x1e   : > { %s218_s1 = sshll.u32 %s210_s14, 4  ;;  %s216_s10 = sshll.u32 %s215_s13, 4  ;;  %s219_s1 = int_to_ptr.vmem [resolvable:$true] %s218_s1  ;;  %s217_s10 = int_to_ptr.hbm [resolvable:$true] %s216_s10 }
  0x1f   : > { %s207_s28 = scalar_lea.sflag [#allocation3], %s206_s25  ;;  %s797_s12 = sshra.s32 %s217_s10, 4  ;;  %s798_s12 = int_to_ptr.hbm [resolvable:$true] %s797_s12 }
  0x20   : > { %s799_s3 = scalar_lea.hbm %s798_s12, 128  ;;  %p801_p8 = pneg %p1013_p7 }
  0x21   : > { %p800_p5 = scmp.ne.s32.totalorder %s798_s12, %s799_s3  ;;  %s804_s23 = scalar_lea.hbm %s1193_s0, 256 }
  0x22   : > { %p805_p1 = scmp.lt.s32.totalorder %s798_s12, %s1193_s0  ;;  %p806_p2 = scmp.lt.s32.totalorder %s804_s23, %s799_s3 }
  0x23   : > { %p802_p9 = pnand %p801_p8, %p800_p5 }
  0x24   : > { %p807_p3 = por %p806_p2, %p805_p1 }
  0x25   : > { %p803_p10 = pneg %p802_p9 }
  0x27   : > { %p808_p0 = pnand %p807_p3, %p803_p10 }
  0x29   : > { %811 = shalt.err (!%p808_p0)
}
  0x2a   : > { %s901_s25 = smov 256   ;;  %s902_s26 = smov 16  }
  0x2b   : > { %675 = dma.hbm_to_vmem [thread:$0]  (!%p1013_p7), %s217_s10, 2048, %s219_s1, %s207_s28, %s901_s25, %s901_s25, %s902_s26  }
  0x2c   : > { %230 = sbr.rel (%p995_p13) target bundleno = 635 (0x27b), region = 40  ;;  %s1035_s11 = sand.u32 (!%p995_p13), 1, %s889_s19  }
  0x2d   : > { %s637_s13 = sshll.u32 (!%p995_p13), %s1035_s11, 7  ;;  %s233_s3 = scalar_lea.sflag (!%p995_p13), [#allocation3], %s1035_s11 }
  0x2e   : > { %s1041_s14 = scalar_lea.vmem (!%p995_p13), [#allocation2], %s637_s13 }
  0x31   : > { %872 = dma.done.wait (%p980_p6), %s233_s3, 2048  }
  0x32   : > { %874 = vsyncadd (%p980_p6), %s233_s3, 4294965248 }
  0x33   : > { %876 = dma.done.wait (%p43_p4), [#allocation6], 128  }
  0x34   : > { %878 = vsyncadd (%p43_p4), [#allocation6], 4294967168  ;;  %v1052_v0 = vld [vmem:[%s1041_s14] sm:$0xff]  ;;  %v1055_v1 = vld [vmem:[%s1041_s14 + $0x8] sm:$0xff]  ;;  %vm363_vm0 = vcmask 523264   ;;  %v332_v25 = vlaneseq  ;;  %vm337_vm1 = vcmask 130112  }
  0x35   : > { %v1058_v2 = vld [vmem:[%s1041_s14 + $0x20] sm:$0xff]  ;;  %v290_v3 = vadd.f32 %v1055_v1, %v1052_v0  ;;  %v1063_v4 = vld [vmem:[%s1041_s14 + $0x28] sm:$0xff]  ;;  %v1076_v9 = vld [vmem:[%s1041_s14 + $0x10] sm:$0xff]  ;;  %vm341_vm2 = vcmask 195712   ;;  %vm345_vm3 = vcmask 261312   ;;  %vm349_vm4 = vcmask 326912  }
  0x36   : > { %v1066_v5 = vld [vmem:[%s1041_s14 + $0x40] sm:$0xff]  ;;  %v1069_v6 = vld [vmem:[%s1041_s14 + $0x48] sm:$0xff]  ;;  %v296_v7 = vadd.f32 %v1063_v4, %v1058_v2  ;;  %v1079_v10 = vld [vmem:[%s1041_s14 + $0x18] sm:$0xff]  ;;  %v333_v29 = vand.u32 127, %v332_v25  ;;  %vm353_vm5 = vcmask 392512   ;;  %vm357_vm6 = vcmask 458112  }
  0x37   : > { %v302_v8 = vadd.f32 %v1069_v6, %v1066_v5  ;;  %291 = vadd.xlane.f32.xlu0 %v290_v3  ;;  %v1082_v11 = vld [vmem:[%s1041_s14 + $0x30] sm:$0xff]  ;;  %v1085_v12 = vld [vmem:[%s1041_s14 + $0x38] sm:$0xff]  ;;  %v293_v15 = vadd.f32 %v1079_v10, %v1076_v9  ;;  %v1100_v18 = vld [vmem:[%s1041_s14 + $0x60] sm:$0xff]  ;;  %vm361_vm7 = vcmask 523712   ;;  %vm396_vm8 = vcmask 1043456   ;;  %s1127_s10 = scalar_lea.vmem [#allocation8], %s637_s13 }
  0x38   : > { %297 = vadd.xlane.f32.xlu1 %v296_v7  ;;  %v1088_v13 = vld [vmem:[%s1041_s14 + $0x50] sm:$0xff]  ;;  %v1091_v14 = vld [vmem:[%s1041_s14 + $0x58] sm:$0xff]  ;;  %v299_v16 = vadd.f32 %v1085_v12, %v1082_v11  ;;  %v1103_v19 = vld [vmem:[%s1041_s14 + $0x68] sm:$0xff]  ;;  %v335_v31 = vadd.s32 4294967288, %v333_v29  ;;  %v339_v32 = vadd.s32 4294967280, %v333_v29  ;;  %v343_v35 = vadd.s32 4294967272, %v333_v29 }
  0x39   : > { %303 = vadd.xlane.f32.xlu2 %v302_v8  ;;  %v305_v17 = vadd.f32 %v1091_v14, %v1088_v13  ;;  %v1106_v20 = vld [vmem:[%s1041_s14 + $0x70] sm:$0xff]  ;;  %v1109_v21 = vld [vmem:[%s1041_s14 + $0x78] sm:$0xff]  ;;  %v308_v22 = vadd.f32 %v1103_v19, %v1100_v18  ;;  %v322_v24 = vld [vmem:[#allocation5] sm:$0xf]  ;;  %v347_v39 = vadd.s32 4294967264, %v333_v29  ;;  %v351_v46 = vadd.s32 4294967256, %v333_v29 }
  0x3a   : > { %v311_v23 = vadd.f32 %v1109_v21, %v1106_v20  ;;  %641 = vmatpush.xpose.msk.msra.mxu0 %vm363_vm0, %v322_v24  ;;  %v355_v52 = vadd.s32 4294967248, %v333_v29  ;;  %v359_v55 = vadd.s32 4294967240, %v333_v29  ;;  %v390_v7 = vld [vmem:[#allocation7] sm:$0xf]  ;;  %v323_v8 = vld [vmem:[%s1195_s2] sm:$0x1] }
  0x3b   : > { %643 = vmatpush.msk.msra.mxu1 %vm396_vm8, %v390_v7  ;;  %vm392_vm9 = vcmask 31744   ;;  %s652_s28 = sshll.u32 %s956_s22, 7  ;;  %s533_s23 = sshll.u32 %s1127_s10, 4  ;;  %s534_s23 = int_to_ptr.vmem [resolvable:$true] %s533_s23 }
  0x3c   : > { %s532_s17 = scalar_lea.hbm %s1198_s5, %s652_s28  ;;  %s521_s22 = scalar_lea.sflag [#allocation4], %s1035_s11 }
  0x3d   : > { %s535_s9 = sshll.u32 %s532_s17, 4  ;;  %s847_s3 = scalar_lea.hbm %s1198_s5, 256  ;;  %s536_s9 = int_to_ptr.hbm [resolvable:$true] %s535_s9 }
  0x3e   : > { %s841_s8 = sshra.s32 %s536_s9, 4  ;;  %s842_s8 = int_to_ptr.hbm [resolvable:$true] %s841_s8 }
  0x3f   : > { %294 = vadd.xlane.f32.xlu0 %v293_v15  ;;  %s843_s25 = scalar_lea.hbm %s842_s8, 128  ;;  %p848_p0 = scmp.lt.s32.totalorder %s842_s8, %s1198_s5 }
  0x40   : > { %300 = vadd.xlane.f32.xlu1 %v299_v16  ;;  %p844_p4 = scmp.ne.s32.totalorder %s842_s8, %s843_s25  ;;  %p849_p7 = scmp.lt.s32.totalorder %s847_s3, %s843_s25 }
  0x41   : > { %306 = vadd.xlane.f32.xlu2 %v305_v17 }
  0x42   : > { %p845_p6 = pnand %p844_p4, %p987_p11  ;;  %p850_p5 = por %p849_p7, %p848_p0 }
  0x44   : > { %p846_p13 = pneg %p845_p6 }
  0x46   : > { %p851_p8 = pnand %p850_p5, %p846_p13 }
  0x47   : > { %309 = vadd.xlane.f32.xlu0 %v308_v22  ;;  %v441_v22 = vshrl.u32 %v332_v25, 7 }
  0x48   : > { %312 = vadd.xlane.f32.xlu1 %v311_v23 }
  0x49   : > { %724 = vset.pattern.permute.xlu2 %v441_v22  ;;  %v454_v23 = vadd.s32 16, %v441_v22  ;;  %v448_v24 = vadd.s32 8, %v441_v22 }
  0x4b   : > { %726 = vset.pattern.permute.xlu1 %v454_v23  ;;  %725 = vset.pattern.permute.xlu0 %v448_v24 }
  0xaa   : > { %v292_v26 = vpop.xlane.xlu0 %291 }
  0xab   : > { %v298_v27 = vpop.xlane.xlu1 %297  ;;  %v314_v30 = vmul.f32 0.00390625, %v292_v26  ;;  %v391_v26 = vld [vmem:[%s1197_s4] sm:$0x1] }
  0xac   : > { %v304_v28 = vpop.xlane.xlu2 %303  ;;  %v316_v33 = vmul.f32 0.00390625, %v298_v27 }
  0xad   : > { %v334_v41 = vperm.slane %v314_v30, %v333_v29  ;;  %v318_v42 = vmul.f32 0.00390625, %v304_v28 }
  0xae   : > { %v340_v44 = vperm.slane %v316_v33, %v339_v32 }
  0xaf   : > { %v348_v50 = vperm.slane %v318_v42, %v347_v39  ;;  %v472_v42 = vadd.s32 40, %v441_v22 }
  0xb2   : > { %v295_v34 = vpop.xlane.xlu0 %294 }
  0xb3   : > { %v315_v36 = vmul.f32 0.00390625, %v295_v34  ;;  %v301_v37 = vpop.xlane.xlu1 %300 }
  0xb4   : > { %v307_v38 = vpop.xlane.xlu2 %306  ;;  %v317_v40 = vmul.f32 0.00390625, %v301_v37 }
  0xb5   : > { %v336_v43 = vperm.slane %v315_v36, %v335_v31  ;;  %v319_v47 = vmul.f32 0.00390625, %v307_v38 }
  0xb6   : > { %v344_v45 = vperm.slane %v317_v40, %v343_v35 }
  0xb7   : > { %v338_v48 = vsel %vm337_vm1, %v336_v43, %v334_v41  ;;  %v352_v53 = vperm.slane %v319_v47, %v351_v46  ;;  %v460_v43 = vadd.s32 24, %v441_v22  ;;  %v478_v46 = vadd.s32 48, %v441_v22 }
  0xb8   : > { %v342_v49 = vsel %vm341_vm2, %v340_v44, %v338_v48  ;;  %v484_v44 = vadd.s32 56, %v441_v22 }
  0xb9   : > { %v346_v51 = vsel %vm345_vm3, %v344_v45, %v342_v49  ;;  %v466_v45 = vadd.s32 32, %v441_v22 }
  0xba   : > { %v310_v54 = vpop.xlane.xlu0 %309  ;;  %v350_v58 = vsel %vm349_vm4, %v348_v50, %v346_v51 }
  0xbb   : > { %v320_v56 = vmul.f32 0.00390625, %v310_v54  ;;  %v313_v57 = vpop.xlane.xlu1 %312  ;;  %v354_v62 = vsel %vm353_vm5, %v352_v53, %v350_v58 }
  0xbc   : > { %v321_v59 = vmul.f32 0.00390625, %v313_v57 }
  0xbd   : > { %v356_v60 = vperm.slane %v320_v56, %v355_v52 }
  0xbe   : > { %v360_v61 = vperm.slane %v321_v59, %v359_v55 }
  0xbf   : > { %v358_v63 = vsel %vm357_vm6, %v356_v60, %v354_v62 }
  0xc0   : > { %v362_v3 = vsel %vm361_vm7, %v360_v61, %v358_v63 }
  0xc1   : > { %642 = vmatmul.msk.f32.vlgmr.msra.gmra.mxu0 %vm363_vm0, %v362_v3 }
 0x13e   : > { %v386_v15 = vpop.f32.mrf.mxu0 }
 0x13f   : > { %v387_v16 = vadd.f32 %v386_v15, %v323_v8 }
 0x141   : > { %v389_v17 = vmax.f32 %v387_v16, 0.0 }
 0x143   : > { %644 = vmatmul.msk.f32.vlgmr.msra.gmra.mxu1 %vm392_vm9, %v389_v17 }
 0x1c0   : > { %v417_v27 = vpop.f32.mrf.mxu1 }
 0x1c1   : > { %v418_v28 = vadd.f32 %v417_v27, %v391_v26 }
 0x1c3   : > { %v645_v29 = vmul.f32 -1.442695, %v418_v28 }
 0x1c5   : > { %733 = vpow2.f32 %v645_v29 }
 0x1cb   : > { %v734_v30 = vpop.eup %733 }
 0x1cc   : > { %v423_v31 = vadd.f32 1.0, %v734_v30 }
 0x1ce   : > { %735 = vrcp.f32 %v423_v31  ;;  %v435_v25 = vand.u32 2147483648, %v423_v31  ;;  %v433_v36 = vand.u32 2147483647, %v423_v31  ;;  %vm429_vm11 = vweird.f32 %v423_v31 }
 0x1d0   : > { %v436_v38 = vor.u32 1.1754944e-38, %v435_v25  ;;  %vm434_vm13 = vcmp.eq.f32.partialorder %v433_v36, 8.507059e+37 }
 0x1d4   : > { %v736_v32 = vpop.eup %735 }
 0x1d5   : > { %v425_v33 = vmul.f32 %v736_v32, %v423_v31  ;;  %vm430_vm10 = vweird.f32 %v736_v32 }
 0x1d6   : > { %vm431_vm12 = vmor %vm429_vm11, %vm430_vm10 }
 0x1d7   : > { %v426_v34 = vsub.f32 1.0, %v425_v33 }
 0x1d9   : > { %v427_v35 = vmul.f32 %v736_v32, %v426_v34 }
 0x1db   : > { %v428_v37 = vadd.f32 %v736_v32, %v427_v35 }
 0x1dd   : > { %v432_v39 = vsel %vm431_vm12, %v736_v32, %v428_v37 }
 0x1de   : > { %v437_v40 = vsel %vm434_vm13, %v436_v38, %v432_v39 }
 0x1df   : > { %v439_v41 = vperm.slane %v437_v40, 0 }
 0x1e1   : > { %456 = vperm.xlu1 %726, %v439_v41   ;;  %450 = vperm.xlu0 %725, %v439_v41  }
 0x1e2   : > { %444 = vperm.xlu2 %724, %v439_v41  }
 0x1e9   : > { %729 = vset.pattern.permute.xlu1 %v472_v42  ;;  %732 = vset.pattern.permute.xlu0 %v484_v44 }
 0x1ea   : > { %727 = vset.pattern.permute.xlu2 %v460_v43 }
 0x1f1   : > { %474 = vperm.xlu1 %729, %v439_v41  }
 0x1f2   : > { %462 = vperm.xlu2 %727, %v439_v41  }
 0x1f9   : > { %731 = vset.pattern.permute.xlu1 %v484_v44 }
 0x1fa   : > { %728 = vset.pattern.permute.xlu2 %v466_v45 }
 0x201   : > { %486 = vperm.xlu1 %731, %v439_v41  }
 0x202   : > { %468 = vperm.xlu2 %728, %v439_v41  }
 0x20a   : > { %730 = vset.pattern.permute.xlu2 %v478_v46 }
 0x212   : > { %480 = vperm.xlu2 %730, %v439_v41  }
 0x23c   : > { %v445_v47 = vpop.permute.xlu2 %444 }
 0x23d   : > { %v488_v48 = vmul.f32 %v445_v47, %v1052_v0  ;;  %v489_v49 = vmul.f32 %v445_v47, %v1055_v1 }
 0x23f   : > { %504 = vst [vmem:[%s1127_s10] sm:$0xff] %v488_v48 }
 0x240   : > { %505 = vst [vmem:[%s1127_s10 + $0x8] sm:$0xff] %v489_v49 }
 0x24c   : > { %v463_v50 = vpop.permute.xlu2 %462 }
 0x24d   : > { %v494_v51 = vmul.f32 %v463_v50, %v1082_v11  ;;  %v495_v0 = vmul.f32 %v463_v50, %v1085_v12 }
 0x24f   : > { %510 = vst [vmem:[%s1127_s10 + $0x30] sm:$0xff] %v494_v51 }
 0x250   : > { %511 = vst [vmem:[%s1127_s10 + $0x38] sm:$0xff] %v495_v0 }
 0x253   : > { %v457_v1 = vpop.permute.xlu1 %456  ;;  %v451_v52 = vpop.permute.xlu0 %450 }
 0x254   : > { %v492_v53 = vmul.f32 %v457_v1, %v1058_v2  ;;  %v493_v54 = vmul.f32 %v457_v1, %v1063_v4  ;;  %v490_v55 = vmul.f32 %v451_v52, %v1076_v9  ;;  %v491_v56 = vmul.f32 %v451_v52, %v1079_v10 }
 0x256   : > { %508 = vst [vmem:[%s1127_s10 + $0x20] sm:$0xff] %v492_v53 }
 0x257   : > { %509 = vst [vmem:[%s1127_s10 + $0x28] sm:$0xff] %v493_v54 }
 0x258   : > { %506 = vst [vmem:[%s1127_s10 + $0x10] sm:$0xff] %v490_v55 }
 0x259   : > { %507 = vst [vmem:[%s1127_s10 + $0x18] sm:$0xff] %v491_v56 }
 0x25c   : > { %v469_v11 = vpop.permute.xlu2 %468 }
 0x25d   : > { %v496_v12 = vmul.f32 %v469_v11, %v1066_v5  ;;  %v497_v2 = vmul.f32 %v469_v11, %v1069_v6 }
 0x25f   : > { %512 = vst [vmem:[%s1127_s10 + $0x40] sm:$0xff] %v496_v12 }
 0x260   : > { %513 = vst [vmem:[%s1127_s10 + $0x48] sm:$0xff] %v497_v2 }
 0x263   : > { %v475_v4 = vpop.permute.xlu1 %474 }
 0x264   : > { %v498_v9 = vmul.f32 %v475_v4, %v1088_v13  ;;  %v499_v57 = vmul.f32 %v475_v4, %v1091_v14 }
 0x266   : > { %514 = vst [vmem:[%s1127_s10 + $0x50] sm:$0xff] %v498_v9 }
 0x267   : > { %515 = vst [vmem:[%s1127_s10 + $0x58] sm:$0xff] %v499_v57 }
 0x26c   : > { %v481_v10 = vpop.permute.xlu2 %480 }
 0x26d   : > { %v500_v58 = vmul.f32 %v481_v10, %v1100_v18  ;;  %v501_v5 = vmul.f32 %v481_v10, %v1103_v19 }
 0x26f   : > { %516 = vst [vmem:[%s1127_s10 + $0x60] sm:$0xff] %v500_v58 }
 0x270   : > { %517 = vst [vmem:[%s1127_s10 + $0x68] sm:$0xff] %v501_v5 }
 0x273   : > { %v487_v6 = vpop.permute.xlu1 %486 }
 0x274   : > { %v502_v13 = vmul.f32 %v487_v6, %v1106_v20  ;;  %v503_v14 = vmul.f32 %v487_v6, %v1109_v21 }
 0x276   : > { %518 = vst [vmem:[%s1127_s10 + $0x70] sm:$0xff] %v502_v13 }
 0x277   : > { %519 = vst [vmem:[%s1127_s10 + $0x78] sm:$0xff] %v503_v14 }
 0x278   : > { %854 = shalt.err (!%p851_p8)
}
 0x279   : > { %s903_s11 = smov 256   ;;  %s904_s29 = smov 16  }
 0x27a   : > { %663 = dma.vmem_to_hbm [thread:$0]  (%p987_p11), %s534_s23, 2048, %s536_s9, %s521_s22, %s903_s11, %s903_s11, %s904_s29  }
 0x27b PF: > { %s550_s7 = sand.u32 1, %s885_s18   ;;  %p1209_p9 = scmp.ge.s32.totalorder %s897_s21, 2 }
 0x27c   : > { %s551_s16 = scalar_lea.sflag [#allocation4], %s550_s7 }
 0x27d   : > { %p677_p10 = pnand %p1209_p9, %p991_p12 }
 0x27f   : > { %p678_p1 = pneg %p677_p10 }
 0x281   : > { %880 = dma.done.wait (%p678_p1), %s551_s16, 2048  }
 0x282   : > { %882 = vsyncadd (%p678_p1), %s551_s16, 4294965248  ;;  %p19_p2 = scmp.ge.s32.totalorder %s960_s24, 4   ;;  %s1210_s18 = smov %s889_s19 }
 0x283   : > { %s1211_s19 = smov %s893_s20  ;;  %s1212_s20 = smov %s972_s27 }
 0x284   : > { %s1213_s21 = smov %s960_s24  ;;  %21 = sbr.rel (!%p19_p2) target bundleno = 9 (0x9), region = 93 }
 0x289   :  { %557 = vsyncpa [#allocation3], 1 }
 0x28a   :  { %559 = vsyncpa [#allocation3 + $0x1], 1 }
 0x28b   :  { %560 = vsyncpa [#allocation6], 1 }
 0x28c   :  { %561 = vsyncpa [#allocation4], 1 }
 0x28d   :  { %563 = vsyncpa [#allocation4 + $0x1], 1 }

</bundles_post_ra>
